<compile_context>
chip_gen: v7x
topology: tpu7x:2x2x1
jax: 0.10.0
libtpu: 0.0.40
codegen_flags: <defaults>
</compile_context>

<pallas_src>
import functools

import jax
import jax.numpy as jnp
from jax.experimental import pallas as pl
from jax.experimental.pallas import tpu as pltpu


def _round_up(v, m):
    return ((v + m - 1) // m) * m


def _rnn_kernel(x_ref, wx_ref, wh_ref, b_ref, wc_ref, bc_ref, out_ref,
                pre_ref, h_ref, *, length, t_chunk, b_tile, latent_pad,
                unroll, compute_dtype):
    ti = pl.program_id(1)

    # ---- Reset carried hidden state at the start of each batch tile's sweep.
    @pl.when(ti == 0)
    def _():
        h_ref[...] = jnp.zeros_like(h_ref)

    # ---- Phase 1: chunk input projection (time-independent within chunk) ----
    # One (t_chunk*b_tile, embed_pad) @ (embed_pad, latent_pad) MXU matmul for
    # the whole chunk; bias broadcast/added exactly once here.
    x2d = x_ref[...].reshape(t_chunk * b_tile, -1)
    pre = (jnp.dot(x2d, wx_ref[...], preferred_element_type=jnp.float32)
           + b_ref[...])
    pre_ref[...] = pre.reshape(t_chunk, b_tile, latent_pad)

    # ---- Phase 2: sequential recurrence within the chunk -------------------
    def step(l, h):
        h_new = jnp.tanh(
            jnp.dot(h.astype(compute_dtype), wh_ref[...],
                    preferred_element_type=jnp.float32)
            + pre_ref[l])
        # Mask out padded timesteps when length is not a multiple of t_chunk.
        valid = (ti * t_chunk + l) < length
        return jnp.where(valid, h_new, h)

    h = jax.lax.fori_loop(0, t_chunk, step, h_ref[...], unroll=unroll)
    h_ref[...] = h  # carry across time chunks

    # ---- Phase 3: classifier, only after the last time chunk ---------------
    @pl.when(ti == pl.num_programs(1) - 1)
    def _():
        out_ref[...] = (
            jnp.dot(h.astype(compute_dtype), wc_ref[...],
                    preferred_element_type=jnp.float32)
            + bc_ref[...]).astype(out_ref.dtype)


def recurrent_nn_forward(x, wx, wh, b, wc, bc, *, t_chunk=4, b_tile=8,
                         unroll=4, compute_dtype=jnp.float32):
    length, batch, embed = x.shape
    latent = wh.shape[0]
    n_class = wc.shape[1]

    # Lane/sublane-dense padded shapes.
    embed_pad = _round_up(embed, 128)
    latent_pad = _round_up(latent, 128)
    nclass_pad = _round_up(n_class, 128)
    b_tile = _round_up(max(b_tile, 8), 8)
    batch_pad = _round_up(batch, b_tile)
    n_bt = batch_pad // b_tile
    n_tc = pl.cdiv(length, t_chunk)
    length_pad = n_tc * t_chunk
    unroll = max(1, min(unroll, t_chunk))

    # Zero-pad inputs/weights; zeros in the padding keep the recurrence exact
    # on the real rows/columns (padded h lanes stay identically 0).
    f32 = jnp.float32
    xp = jnp.zeros((length_pad, batch_pad, embed_pad), f32)
    xp = xp.at[:length, :batch, :embed].set(x.astype(f32)).astype(compute_dtype)
    wxp = jnp.zeros((embed_pad, latent_pad), f32).at[:embed, :latent].set(
        wx.astype(f32)).astype(compute_dtype)
    whp = jnp.zeros((latent_pad, latent_pad), f32).at[:latent, :latent].set(
        wh.astype(f32)).astype(compute_dtype)
    bp = jnp.zeros((1, latent_pad), f32).at[:, :latent].set(b.astype(f32))
    wcp = jnp.zeros((latent_pad, nclass_pad), f32).at[:latent, :n_class].set(
        wc.astype(f32)).astype(compute_dtype)
    bcp = jnp.zeros((1, nclass_pad), f32).at[:, :n_class].set(bc.astype(f32))

    kernel = functools.partial(
        _rnn_kernel, length=length, t_chunk=t_chunk, b_tile=b_tile,
        latent_pad=latent_pad, unroll=unroll, compute_dtype=compute_dtype)

    itemsize = jnp.dtype(compute_dtype).itemsize
    cost = pl.CostEstimate(
        flops=2 * length * batch * (embed + latent) * latent
              + 2 * batch * latent * n_class,
        transcendentals=length * batch * latent,
        bytes_accessed=int(xp.size * itemsize
                           + (wxp.size + whp.size + wcp.size) * itemsize
                           + (bp.size + bcp.size) * 4
                           + batch_pad * nclass_pad * 4),
    )

    out_padded = pl.pallas_call(
        kernel,
        out_shape=jax.ShapeDtypeStruct((batch_pad, nclass_pad), jnp.float32),
        grid_spec=pltpu.PrefetchScalarGridSpec(
            num_scalar_prefetch=0,
            grid=(n_bt, n_tc),  # (batch tiles, time chunks)
            in_specs=[
                # x chunk: (t_chunk, b_tile, embed_pad), pipelined over time.
                pl.BlockSpec((t_chunk, b_tile, embed_pad),
                             lambda bi, ti: (ti, bi, 0)),
                pl.BlockSpec((embed_pad, latent_pad), lambda bi, ti: (0, 0)),  # Wx
                pl.BlockSpec((latent_pad, latent_pad), lambda bi, ti: (0, 0)), # Wh
                pl.BlockSpec((1, latent_pad), lambda bi, ti: (0, 0)),          # b
                pl.BlockSpec((latent_pad, nclass_pad), lambda bi, ti: (0, 0)), # Wc
                pl.BlockSpec((1, nclass_pad), lambda bi, ti: (0, 0)),          # bc
            ],
            out_specs=pl.BlockSpec((b_tile, nclass_pad), lambda bi, ti: (bi, 0)),
            scratch_shapes=[
                pltpu.VMEM((t_chunk, b_tile, latent_pad), jnp.float32),  # pre
                pltpu.VMEM((b_tile, latent_pad), jnp.float32),           # h carry
            ],
        ),
        compiler_params=pltpu.CompilerParams(
            # batch tiles are independent (v7x megacore); time is sequential
            dimension_semantics=("parallel", "arbitrary"),
            # sized for v7x's 64 MiB physical VMEM (default scoped limit is 32 MiB)
            vmem_limit_bytes=48 * 1024 * 1024,
        ),
        cost_estimate=cost,
    )(xp, wxp, whp, bp, wcp, bcp)

    return out_padded[:batch, :n_class]


def reference_forward(x, wx, wh, b, wc, bc):
    """Pure-JAX reference of the same recurrence."""
    h = jnp.zeros((x.shape[1], wh.shape[0]), jnp.float32)
    for l in range(x.shape[0]):
        h = jnp.tanh(x[l] @ wx + h @ wh + b[0])
    return h @ wc + bc[0]


if __name__ == "__main__":
    # Small shapes consistent with the module's forward contract.
    length, batch, embed, latent, n_class = 8, 2, 16, 32, 4

    key = jax.random.PRNGKey(0)
    kx, k1, k2, k3, k4, k5 = jax.random.split(key, 6)

    x = jax.random.normal(kx, (length, batch, embed), dtype=jnp.float32)

    # Deterministic parameter init (uniform, scaled like nn.Linear default).
    s_cell = 1.0 / jnp.sqrt(embed + latent)
    s_cls = 1.0 / jnp.sqrt(latent)
    wx = jax.random.uniform(k1, (embed, latent), jnp.float32, -s_cell, s_cell)
    wh = jax.random.uniform(k2, (latent, latent), jnp.float32, -s_cell, s_cell)
    b = jax.random.uniform(k3, (1, latent), jnp.float32, -s_cell, s_cell)
    wc = jax.random.uniform(k4, (latent, n_class), jnp.float32, -s_cls, s_cls)
    bc = jax.random.uniform(k5, (1, n_class), jnp.float32, -s_cls, s_cls)

    # t_chunk=4 -> two time chunks, exercising the pipelined/chunked path.
    # For production on v6e/v7x pass compute_dtype=jnp.bfloat16 (and relax the
    # tolerance below accordingly).
    out = recurrent_nn_forward(x, wx, wh, b, wc, bc, t_chunk=4, b_tile=8,
                               unroll=4, compute_dtype=jnp.float32)
    out = jax.block_until_ready(out)

    ref = reference_forward(x, wx, wh, b, wc, bc)
    assert out.shape == (batch, n_class)
    assert jnp.allclose(out, ref, atol=1e-5, rtol=1e-5), "mismatch vs reference"

    print("KERNEL_OK")
</pallas_src>

<mosaic_0001>
module attributes {stable_mosaic.version = 11 : i64} {
  func.func @_rnn_kernel(%arg0: i32, %arg1: i32, %arg2: memref<4x8x128xf32, #tpu.memory_space<vmem>>, %arg3: memref<128x128xf32, #tpu.memory_space<vmem>>, %arg4: memref<128x128xf32, #tpu.memory_space<vmem>>, %arg5: memref<1x128xf32, #tpu.memory_space<vmem>>, %arg6: memref<128x128xf32, #tpu.memory_space<vmem>>, %arg7: memref<1x128xf32, #tpu.memory_space<vmem>>, %arg8: memref<8x128xf32, #tpu.memory_space<vmem>>, %arg9: memref<4x8x128xf32, #tpu.memory_space<vmem>>, %arg10: memref<8x128xf32, #tpu.memory_space<vmem>>) attributes {dimension_semantics = [#tpu.dimension_semantics<parallel>, #tpu.dimension_semantics<arbitrary>], iteration_bounds = array<i64: 1, 2>, scalar_prefetch = 0 : i64, scratch_operands = 2 : i64, tpu.core_type = #tpu.core_type<tc>, window_params = [{transform_indices = @transform_0, window_bounds = array<i64: 4, 8, 128>}, {pipeline_mode = #tpu.pipeline_mode<synchronous>, transform_indices = @transform_1, window_bounds = array<i64: 128, 128>}, {pipeline_mode = #tpu.pipeline_mode<synchronous>, transform_indices = @transform_2, window_bounds = array<i64: 128, 128>}, {pipeline_mode = #tpu.pipeline_mode<synchronous>, transform_indices = @transform_3, window_bounds = array<i64: 1, 128>}, {pipeline_mode = #tpu.pipeline_mode<synchronous>, transform_indices = @transform_4, window_bounds = array<i64: 128, 128>}, {pipeline_mode = #tpu.pipeline_mode<synchronous>, transform_indices = @transform_5, window_bounds = array<i64: 1, 128>}, {transform_indices = @transform_6, window_bounds = array<i64: 8, 128>}]} {
    %c0_i32 = arith.constant 0 : i32
    %0 = arith.cmpi eq, %arg1, %c0_i32 : i32
    %1 = arith.extui %0 : i1 to i32
    %c0_i32_0 = arith.constant 0 : i32
    %2 = arith.cmpi ne, %1, %c0_i32_0 : i32
    scf.if %2 {
      %cst_44 = arith.constant 0.000000e+00 : f32
      %61 = vector.broadcast %cst_44 : f32 to vector<8x128xf32>
      %c0_45 = arith.constant 0 : index
      %c0_46 = arith.constant 0 : index
      %62 = vector.load %arg10[%c0_45, %c0_46] : memref<8x128xf32, #tpu.memory_space<vmem>>, vector<8x128xf32>
      tpu.vector_store %arg10[%c0_45, %c0_46], %61 {strides = array<i32>} : memref<8x128xf32, #tpu.memory_space<vmem>>, vector<8x128xf32>,
    } else {
    }
    %c0 = arith.constant 0 : index
    %c0_1 = arith.constant 0 : index
    %c0_2 = arith.constant 0 : index
    %3 = vector.load %arg2[%c0, %c0_1, %c0_2] : memref<4x8x128xf32, #tpu.memory_space<vmem>>, vector<4x8x128xf32>
    %4 = vector.shape_cast %3 : vector<4x8x128xf32> to vector<32x128xf32>
    %c0_3 = arith.constant 0 : index
    %c0_4 = arith.constant 0 : index
    %5 = vector.load %arg3[%c0_3, %c0_4] : memref<128x128xf32, #tpu.memory_space<vmem>>, vector<128x128xf32>
    %cst = arith.constant dense<0.000000e+00> : vector<32x128xf32>
    %6 = tpu.matmul %4, %5, %cst {dimension_numbers = #tpu.dot_dimension_numbers<[1], [0], [0], [1], [0, 0, 1, 1], [], []>} : vector<32x128xf32>, vector<128x128xf32>, vector<32x128xf32> -> vector<32x128xf32>
    %c0_5 = arith.constant 0 : index
    %c0_6 = arith.constant 0 : index
    %7 = vector.load %arg5[%c0_5, %c0_6] : memref<1x128xf32, #tpu.memory_space<vmem>>, vector<1x128xf32>
    %8 = vector.broadcast %7 : vector<1x128xf32> to vector<32x128xf32>
    %9 = arith.addf %6, %8 : vector<32x128xf32>
    %10 = vector.shape_cast %9 : vector<32x128xf32> to vector<4x8x128xf32>
    %c0_7 = arith.constant 0 : index
    %c0_8 = arith.constant 0 : index
    %c0_9 = arith.constant 0 : index
    %11 = vector.load %arg9[%c0_7, %c0_8, %c0_9] : memref<4x8x128xf32, #tpu.memory_space<vmem>>, vector<4x8x128xf32>
    tpu.vector_store %arg9[%c0_7, %c0_8, %c0_9], %10 {strides = array<i32>} : memref<4x8x128xf32, #tpu.memory_space<vmem>>, vector<4x8x128xf32>,
    %c0_10 = arith.constant 0 : index
    %c0_11 = arith.constant 0 : index
    %12 = vector.load %arg10[%c0_10, %c0_11] : memref<8x128xf32, #tpu.memory_space<vmem>>, vector<8x128xf32>
    %c0_i32_12 = arith.constant 0 : i32
    %c0_13 = arith.constant 0 : index
    %c0_14 = arith.constant 0 : index
    %13 = vector.load %arg4[%c0_13, %c0_14] : memref<128x128xf32, #tpu.memory_space<vmem>>, vector<128x128xf32>
    %cst_15 = arith.constant dense<0.000000e+00> : vector<8x128xf32>
    %14 = tpu.matmul %12, %13, %cst_15 {dimension_numbers = #tpu.dot_dimension_numbers<[1], [0], [0], [1], [0, 0, 1, 1], [], []>} : vector<8x128xf32>, vector<128x128xf32>, vector<8x128xf32> -> vector<8x128xf32>
    %15 = arith.index_cast %c0_i32_12 : i32 to index
    %c0_16 = arith.constant 0 : index
    %c0_17 = arith.constant 0 : index
    %16 = vector.load %arg9[%15, %c0_16, %c0_17] : memref<4x8x128xf32, #tpu.memory_space<vmem>>, vector<1x8x128xf32>
    %17 = vector.shape_cast %16 : vector<1x8x128xf32> to vector<8x128xf32>
    %18 = arith.addf %14, %17 : vector<8x128xf32>
    %19 = math.tanh %18 : vector<8x128xf32>
    %c4_i32 = arith.constant 4 : i32
    %20 = arith.muli %arg1, %c4_i32 : i32
    %21 = arith.addi %20, %c0_i32_12 : i32
    %c8_i32 = arith.constant 8 : i32
    %22 = arith.cmpi slt, %21, %c8_i32 : i32
    %23 = arith.select %22, %19, %12 : vector<8x128xf32>
    %c1_i32 = arith.constant 1 : i32
    %c0_18 = arith.constant 0 : index
    %c0_19 = arith.constant 0 : index
    %24 = vector.load %arg4[%c0_18, %c0_19] : memref<128x128xf32, #tpu.memory_space<vmem>>, vector<128x128xf32>
    %cst_20 = arith.constant dense<0.000000e+00> : vector<8x128xf32>
    %25 = tpu.matmul %23, %24, %cst_20 {dimension_numbers = #tpu.dot_dimension_numbers<[1], [0], [0], [1], [0, 0, 1, 1], [], []>} : vector<8x128xf32>, vector<128x128xf32>, vector<8x128xf32> -> vector<8x128xf32>
    %26 = arith.index_cast %c1_i32 : i32 to index
    %c0_21 = arith.constant 0 : index
    %c0_22 = arith.constant 0 : index
    %27 = vector.load %arg9[%26, %c0_21, %c0_22] : memref<4x8x128xf32, #tpu.memory_space<vmem>>, vector<1x8x128xf32>
    %28 = vector.shape_cast %27 : vector<1x8x128xf32> to vector<8x128xf32>
    %29 = arith.addf %25, %28 : vector<8x128xf32>
    %30 = math.tanh %29 : vector<8x128xf32>
    %c4_i32_23 = arith.constant 4 : i32
    %31 = arith.muli %arg1, %c4_i32_23 : i32
    %32 = arith.addi %31, %c1_i32 : i32
    %c8_i32_24 = arith.constant 8 : i32
    %33 = arith.cmpi slt, %32, %c8_i32_24 : i32
    %34 = arith.select %33, %30, %23 : vector<8x128xf32>
    %c2_i32 = arith.constant 2 : i32
    %c0_25 = arith.constant 0 : index
    %c0_26 = arith.constant 0 : index
    %35 = vector.load %arg4[%c0_25, %c0_26] : memref<128x128xf32, #tpu.memory_space<vmem>>, vector<128x128xf32>
    %cst_27 = arith.constant dense<0.000000e+00> : vector<8x128xf32>
    %36 = tpu.matmul %34, %35, %cst_27 {dimension_numbers = #tpu.dot_dimension_numbers<[1], [0], [0], [1], [0, 0, 1, 1], [], []>} : vector<8x128xf32>, vector<128x128xf32>, vector<8x128xf32> -> vector<8x128xf32>
    %37 = arith.index_cast %c2_i32 : i32 to index
    %c0_28 = arith.constant 0 : index
    %c0_29 = arith.constant 0 : index
    %38 = vector.load %arg9[%37, %c0_28, %c0_29] : memref<4x8x128xf32, #tpu.memory_space<vmem>>, vector<1x8x128xf32>
    %39 = vector.shape_cast %38 : vector<1x8x128xf32> to vector<8x128xf32>
    %40 = arith.addf %36, %39 : vector<8x128xf32>
    %41 = math.tanh %40 : vector<8x128xf32>
    %c4_i32_30 = arith.constant 4 : i32
    %42 = arith.muli %arg1, %c4_i32_30 : i32
    %43 = arith.addi %42, %c2_i32 : i32
    %c8_i32_31 = arith.constant 8 : i32
    %44 = arith.cmpi slt, %43, %c8_i32_31 : i32
    %45 = arith.select %44, %41, %34 : vector<8x128xf32>
    %c3_i32 = arith.constant 3 : i32
    %c0_32 = arith.constant 0 : index
    %c0_33 = arith.constant 0 : index
    %46 = vector.load %arg4[%c0_32, %c0_33] : memref<128x128xf32, #tpu.memory_space<vmem>>, vector<128x128xf32>
    %cst_34 = arith.constant dense<0.000000e+00> : vector<8x128xf32>
    %47 = tpu.matmul %45, %46, %cst_34 {dimension_numbers = #tpu.dot_dimension_numbers<[1], [0], [0], [1], [0, 0, 1, 1], [], []>} : vector<8x128xf32>, vector<128x128xf32>, vector<8x128xf32> -> vector<8x128xf32>
    %48 = arith.index_cast %c3_i32 : i32 to index
    %c0_35 = arith.constant 0 : index
    %c0_36 = arith.constant 0 : index
    %49 = vector.load %arg9[%48, %c0_35, %c0_36] : memref<4x8x128xf32, #tpu.memory_space<vmem>>, vector<1x8x128xf32>
    %50 = vector.shape_cast %49 : vector<1x8x128xf32> to vector<8x128xf32>
    %51 = arith.addf %47, %50 : vector<8x128xf32>
    %52 = math.tanh %51 : vector<8x128xf32>
    %c4_i32_37 = arith.constant 4 : i32
    %53 = arith.muli %arg1, %c4_i32_37 : i32
    %54 = arith.addi %53, %c3_i32 : i32
    %c8_i32_38 = arith.constant 8 : i32
    %55 = arith.cmpi slt, %54, %c8_i32_38 : i32
    %56 = arith.select %55, %52, %45 : vector<8x128xf32>
    %c4_i32_39 = arith.constant 4 : i32
    %c0_40 = arith.constant 0 : index
    %c0_41 = arith.constant 0 : index
    %57 = vector.load %arg10[%c0_40, %c0_41] : memref<8x128xf32, #tpu.memory_space<vmem>>, vector<8x128xf32>
    tpu.vector_store %arg10[%c0_40, %c0_41], %56 {strides = array<i32>} : memref<8x128xf32, #tpu.memory_space<vmem>>, vector<8x128xf32>,
    %c1_i32_42 = arith.constant 1 : i32
    %58 = arith.cmpi eq, %arg1, %c1_i32_42 : i32
    %59 = arith.extui %58 : i1 to i32
    %c0_i32_43 = arith.constant 0 : i32
    %60 = arith.cmpi ne, %59, %c0_i32_43 : i32
    scf.if %60 {
      %c0_44 = arith.constant 0 : index
      %c0_45 = arith.constant 0 : index
      %61 = vector.load %arg6[%c0_44, %c0_45] : memref<128x128xf32, #tpu.memory_space<vmem>>, vector<128x128xf32>
      %cst_46 = arith.constant dense<0.000000e+00> : vector<8x128xf32>
      %62 = tpu.matmul %56, %61, %cst_46 {dimension_numbers = #tpu.dot_dimension_numbers<[1], [0], [0], [1], [0, 0, 1, 1], [], []>} : vector<8x128xf32>, vector<128x128xf32>, vector<8x128xf32> -> vector<8x128xf32>
      %c0_47 = arith.constant 0 : index
      %c0_48 = arith.constant 0 : index
      %63 = vector.load %arg7[%c0_47, %c0_48] : memref<1x128xf32, #tpu.memory_space<vmem>>, vector<1x128xf32>
      %64 = vector.broadcast %63 : vector<1x128xf32> to vector<8x128xf32>
      %65 = arith.addf %62, %64 : vector<8x128xf32>
      %c0_49 = arith.constant 0 : index
      %c0_50 = arith.constant 0 : index
      %66 = vector.load %arg8[%c0_49, %c0_50] : memref<8x128xf32, #tpu.memory_space<vmem>>, vector<8x128xf32>
      tpu.vector_store %arg8[%c0_49, %c0_50], %65 {strides = array<i32>} : memref<8x128xf32, #tpu.memory_space<vmem>>, vector<8x128xf32>,
    } else {
    }
    return
  }
  func.func @transform_0(%arg0: i32, %arg1: i32) -> (i32, i32, i32) {
    %c0_i32 = arith.constant 0 : i32
    %c0_i32_0 = arith.constant 0 : i32
    return %arg1, %arg0, %c0_i32 : i32, i32, i32
  }
  func.func @transform_1(%arg0: i32, %arg1: i32) -> (i32, i32) {
    %c0_i32 = arith.constant 0 : i32
    %c0_i32_0 = arith.constant 0 : i32
    %c0_i32_1 = arith.constant 0 : i32
    return %c0_i32, %c0_i32_0 : i32, i32
  }
  func.func @transform_2(%arg0: i32, %arg1: i32) -> (i32, i32) {
    %c0_i32 = arith.constant 0 : i32
    %c0_i32_0 = arith.constant 0 : i32
    %c0_i32_1 = arith.constant 0 : i32
    return %c0_i32, %c0_i32_0 : i32, i32
  }
  func.func @transform_3(%arg0: i32, %arg1: i32) -> (i32, i32) {
    %c0_i32 = arith.constant 0 : i32
    %c0_i32_0 = arith.constant 0 : i32
    %c0_i32_1 = arith.constant 0 : i32
    return %c0_i32, %c0_i32_0 : i32, i32
  }
  func.func @transform_4(%arg0: i32, %arg1: i32) -> (i32, i32) {
    %c0_i32 = arith.constant 0 : i32
    %c0_i32_0 = arith.constant 0 : i32
    %c0_i32_1 = arith.constant 0 : i32
    return %c0_i32, %c0_i32_0 : i32, i32
  }
  func.func @transform_5(%arg0: i32, %arg1: i32) -> (i32, i32) {
    %c0_i32 = arith.constant 0 : i32
    %c0_i32_0 = arith.constant 0 : i32
    %c0_i32_1 = arith.constant 0 : i32
    return %c0_i32, %c0_i32_0 : i32, i32
  }
  func.func @transform_6(%arg0: i32, %arg1: i32) -> (i32, i32) {
    %c0_i32 = arith.constant 0 : i32
    %c0_i32_0 = arith.constant 0 : i32
    return %arg0, %c0_i32 : i32, i32
  }
}

</mosaic_0001>

<bundles_post_ra>
// kernel: tpu_custom_call.1
= control target key start
LH: loop header
LB: loop body
LE: loop exit
PB: predicated region body
PF: predicated region fallthrough
CT: control target
= control target key end

     0   :  { %11 = vsyncpa [#allocation5], 0  ;;  %s2202_s0 = inlined_call_operand.hbm [shape: f32[8,8,128], index: 0, kind: input, shape index: {}]   ;;  %s2203_s1 = inlined_call_operand.hbm [shape: f32[128,128], index: 1, kind: input, shape index: {}]   ;;  %s2204_s2 = inlined_call_operand.hbm [shape: f32[128,128], index: 2, kind: input, shape index: {}]   ;;  %s2205_s3 = inlined_call_operand.vmem [shape: f32[1,128], index: 3, kind: input, shape index: {}]   ;;  %s2206_s4 = inlined_call_operand.hbm [shape: f32[128,128], index: 4, kind: input, shape index: {}]   ;;  %s2207_s5 = inlined_call_operand.vmem [shape: f32[1,128], index: 5, kind: input, shape index: {}]   ;;  %s2208_s6 = inlined_call_operand.hbm [shape: f32[8,128], index: 6, kind: output, shape index: {}]  }
   0x1   :  { %13 = vsyncpa [#allocation5 + $0x1], 0 }
   0x2   :  { %14 = vsyncpa [#allocation8], 0 }
   0x3   :  { %15 = vsyncpa [#allocation11], 0 }
   0x4   :  { %16 = vsyncpa [#allocation6], 0  ;;  %s1833_s21 = smov 0   ;;  %s1835_s22 = smov 0  }
   0x5   :  { %s1837_s23 = smov 0   ;;  %s1839_s24 = smov 0  }
   0x6   :  { %s1841_s25 = smov 0   ;;  %s1843_s26 = smov 0  }
   0x7 LB: > { %s2211_s27 = sadd.s32 4294967295, %s1782_s26   ;;  %p56_p0 = scmp.ne.s32.totalorder %s1766_s22, %s1762_s21  ;;  %s1782_s26 = sphi %s1843_s26, %s22_s26   ;;  %s1778_s25 = sphi %s1841_s25, %s2230_s25   ;;  %s1774_s24 = sphi %s1839_s24, %s2229_s24   ;;  %s1770_s23 = sphi %s1837_s23, %s2228_s23   ;;  %s1766_s22 = sphi %s1835_s22, %s2227_s22   ;;  %s1762_s21 = sphi %s1833_s21, %s2226_s21  }
   0x8   : > { %p1865_p1 = scmp.eq.s32.totalorder %s2211_s27, 0  ;;  %p977_p2 = scmp.ge.s32.totalorder %s1782_s26, 1 }
   0x9   : > { %p198_p3 = scmp.lt.s32.totalorder %s1782_s26, 3  ;;  %s1784_s7 = smov [#allocation7]  }
   0xa   : > { %s2214_s28 = scalar_select %p1865_p1, 1, 0 }
   0xb   : > { %p1873_p4 = por %p1865_p1, %p56_p0  ;;  %p1877_p5 = pnand %p977_p2, %p198_p3 }
   0xc   : > { %s210_s8 = sshll.u32 %s1784_s7, 4  ;;  %s1785_s10 = smov [#allocation9]   ;;  %s1881_s8 = int_to_ptr.vmem [resolvable:$true] %s210_s8 }
   0xd   : > { %s2215_s29 = scalar_select %p1873_p4, 1, 0 }
   0xe   : > { %s2216_s30 = scalar_select %p1877_p5, 1, 0 }
   0xf   : > { %p1488_p6 = pneg %p1877_p5  ;;  %s223_s11 = sshll.u32 %s1785_s10, 4  ;;  %s1891_s11 = int_to_ptr.vmem [resolvable:$true] %s223_s11 }
  0x10   : > { %s1786_s12 = smov [#allocation10]   ;;  %s1580_s16 = scalar_lea.hbm %s2203_s1, 2048 }
  0x11   : > { %p1887_p7 = pnand %p1488_p6, %p1865_p1  ;;  %s1893_s13 = sshll.u32 %s1786_s12, 4  ;;  %s240_s13 = int_to_ptr.vmem [resolvable:$true] %s1893_s13 }
  0x12   : > { %p1581_p8 = scmp.ne.s32.totalorder %s2203_s1, %s1580_s16  ;;  %p1587_p12 = scmp.lt.u32.totalorder %s1580_s16, %s2203_s1 }
  0x13   : > { %p1903_p9 = pneg %p1887_p7 }
  0x15   : > { %p1583_p10 = pnand %p1903_p9, %p1581_p8 }
  0x17   : > { %p1584_p11 = pneg %p1583_p10 }
  0x19   : > { %p1589_p13 = pnand %p1587_p12, %p1584_p11 }
  0x1b   : > { %1592 = shalt.err (!%p1589_p13)
}
  0x1c   : > { %s1593_s7 = scalar_lea.vmem %s1881_s8, 2048  ;;  %p1601_p6 = scmp.lt.s32.totalorder %s1881_s8, %s1881_s8 }
  0x1d   : > { %p1594_p0 = scmp.ne.s32.totalorder %s1881_s8, %s1593_s7  ;;  %p1602_p1 = scmp.lt.s32.totalorder %s1593_s7, %s1593_s7 }
  0x1f   : > { %p1596_p2 = pnand %p1594_p0, %p1903_p9  ;;  %p1603_p8 = por %p1602_p1, %p1601_p6 }
  0x21   : > { %p1597_p3 = pneg %p1596_p2 }
  0x23   : > { %p1604_p10 = pnand %p1603_p8, %p1597_p3 }
  0x25   : > { %1607 = shalt.err (!%p1604_p10)
}
  0x26   : > { %s1787_s10 = smov 128   ;;  %s1788_s12 = smov 8  }
  0x27   : > { %1491 = dma.hbm_to_vmem [thread:$0]  (!%p1887_p7), %s2203_s1, 2048, %s1881_s8, [#allocation8], %s1787_s10, %s1787_s10, %s1788_s12  }
  0x28   : > { %s1608_s18 = scalar_lea.hbm %s2204_s2, 2048 }
  0x29   : > { %p1609_p1 = scmp.ne.s32.totalorder %s2204_s2, %s1608_s18  ;;  %p1615_p13 = scmp.lt.u32.totalorder %s1608_s18, %s2204_s2 }
  0x2b   : > { %p1611_p11 = pnand %p1609_p1, %p1903_p9 }
  0x2d   : > { %p1612_p12 = pneg %p1611_p11 }
  0x2f   : > { %p1617_p0 = pnand %p1615_p13, %p1612_p12 }
  0x31   : > { %1620 = shalt.err (!%p1617_p0)
}
  0x32   : > { %s1621_s8 = scalar_lea.vmem %s1891_s11, 2048  ;;  %p1629_p8 = scmp.lt.s32.totalorder %s1891_s11, %s1891_s11 }
  0x33   : > { %p1622_p2 = scmp.ne.s32.totalorder %s1891_s11, %s1621_s8  ;;  %p1630_p10 = scmp.lt.s32.totalorder %s1621_s8, %s1621_s8 }
  0x35   : > { %p1624_p3 = pnand %p1622_p2, %p1903_p9  ;;  %p1631_p1 = por %p1630_p10, %p1629_p8 }
  0x37   : > { %p1625_p6 = pneg %p1624_p3 }
  0x39   : > { %p1632_p11 = pnand %p1631_p1, %p1625_p6 }
  0x3b   : > { %1635 = shalt.err (!%p1632_p11)
}
  0x3c   : > { %1494 = dma.hbm_to_vmem [thread:$0]  (!%p1887_p7), %s2204_s2, 2048, %s1891_s11, [#allocation8], %s1787_s10, %s1787_s10, %s1788_s12  }
  0x3d   : > { %s1636_s17 = scalar_lea.hbm %s2206_s4, 2048 }
  0x3e   : > { %p1637_p12 = scmp.ne.s32.totalorder %s2206_s4, %s1636_s17  ;;  %p1643_p2 = scmp.lt.u32.totalorder %s1636_s17, %s2206_s4 }
  0x40   : > { %p1639_p13 = pnand %p1637_p12, %p1903_p9 }
  0x42   : > { %p1640_p0 = pneg %p1639_p13 }
  0x44   : > { %p1645_p3 = pnand %p1643_p2, %p1640_p0 }
  0x46   : > { %1648 = shalt.err (!%p1645_p3)
}
  0x47   : > { %s1649_s8 = scalar_lea.vmem %s240_s13, 2048  ;;  %p1657_p1 = scmp.lt.s32.totalorder %s240_s13, %s240_s13 }
  0x48   : > { %p1650_p6 = scmp.ne.s32.totalorder %s240_s13, %s1649_s8  ;;  %p1658_p11 = scmp.lt.s32.totalorder %s1649_s8, %s1649_s8 }
  0x4a   : > { %p1652_p8 = pnand %p1650_p6, %p1903_p9  ;;  %p1659_p4 = por %p1658_p11, %p1657_p1 }
  0x4c   : > { %p1653_p10 = pneg %p1652_p8 }
  0x4e   : > { %p1660_p5 = pnand %p1659_p4, %p1653_p10 }
  0x50   : > { %1663 = shalt.err (!%p1660_p5)
}
  0x51   : > { %1497 = dma.hbm_to_vmem [thread:$0]  (!%p1887_p7), %s2206_s4, 2048, %s240_s13, [#allocation11], %s1787_s10, %s1787_s10, %s1788_s12  }
  0x52   : > { %s31_s19 = sadd.s32 1, %s1778_s25  ;;  %p50_p4 = scmp.ne.s32.totalorder %s1770_s23, %s1766_s22 }
  0x53   : > { %p32_p5 = scmp.ge.s32.totalorder %s31_s19, 2  ;;  %p51_p9 = scmp.eq.s32.totalorder %s1782_s26, 0 }
  0x54   : > { %s43_s9 = sadd.s32 1, %s1770_s23  ;;  %s256_s14 = sand.u32 1, %s1770_s23  }
  0x55   : > { %s2232_s19 = smov (%p32_p5, %s31_s19), 0  ;;  %p52_p12 = por %p51_p9, %p50_p4 }
  0x56   : > { %p1505_p13 = scmp.lt.s32.totalorder %s1782_s26, 2  ;;  %s38_s15 = ssub.s32 %s1778_s25, %s2232_s19 }
  0x57   : > { %s982_s16 = sshll.u32 %s256_s14, 5  ;;  %p41_p0 = scmp.eq.s32.totalorder %s38_s15, 0 }
  0x58   : > { %s999_s17 = sshll.u32 %s1778_s25, 9  ;;  %s260_s18 = scalar_lea.vmem [#allocation4], %s982_s16 }
  0x59   : > { %s268_s20 = sshll.u32 %s260_s18, 4  ;;  %s1993_s8 = scalar_lea.hbm %s2202_s0, %s999_s17  ;;  %s1995_s20 = int_to_ptr.vmem [resolvable:$true] %s268_s20 }
  0x5a   : > { %s1988_s21 = scalar_select %p41_p0, %s1770_s23, %s43_s9  }
  0x5b   : > { %p1997_p7 = pnand %p1505_p13, %p52_p12  ;;  %s2001_s27 = scalar_lea.sflag [#allocation5], %s256_s14 }
  0x5c   : > { %s1664_s9 = scalar_lea.hbm %s1993_s8, 512  ;;  %s1669_s17 = scalar_lea.hbm %s2202_s0, 1024 }
  0x5d   : > { %p1665_p2 = scmp.ne.s32.totalorder %s1993_s8, %s1664_s9  ;;  %p1666_p3 = pneg %p1997_p7 }
  0x5e   : > { %p1670_p10 = scmp.lt.u32.totalorder %s1993_s8, %s2202_s0  ;;  %p1671_p1 = scmp.lt.u32.totalorder %s1669_s17, %s1664_s9 }
  0x5f   : > { %p1667_p6 = pnand %p1666_p3, %p1665_p2  ;;  %p1673_p4 = scmp.lt.u32.totalorder %s1664_s9, %s1993_s8 }
  0x60   : > { %p1672_p11 = por %p1671_p1, %p1670_p10 }
  0x61   : > { %p1668_p8 = pneg %p1667_p6 }
  0x62   : > { %p1674_p5 = por %p1673_p4, %p1672_p11 }
  0x64   : > { %p1675_p9 = pnand %p1674_p5, %p1668_p8 }
  0x66   : > { %1678 = shalt.err (!%p1675_p9)
}
  0x67   : > { %s1679_s14 = scalar_lea.vmem %s1995_s20, 512  ;;  %s1789_s7 = smov [#allocation4]  }
  0x68   : > { %p1680_p12 = scmp.ne.s32.totalorder %s1995_s20, %s1679_s14  ;;  %s1684_s15 = sshll.u32 %s1789_s7, 4  ;;  %s1685_s15 = int_to_ptr.vmem [resolvable:$false] %s1684_s15 }
  0x69   : > { %s1686_s16 = scalar_lea.vmem %s1685_s15, 1024  ;;  %p1687_p2 = scmp.lt.s32.totalorder %s1995_s20, %s1685_s15 }
  0x6a   : > { %p1682_p13 = pnand %p1680_p12, %p1666_p3  ;;  %p1688_p6 = scmp.lt.s32.totalorder %s1686_s16, %s1679_s14 }
  0x6c   : > { %p1683_p0 = pneg %p1682_p13  ;;  %p1689_p10 = por %p1688_p6, %p1687_p2 }
  0x6e   : > { %p1690_p1 = pnand %p1689_p10, %p1683_p0 }
  0x70   : > { %1693 = shalt.err (!%p1690_p1)
}
  0x71   : > { %1501 = dma.hbm_to_vmem [thread:$0]  (!%p1997_p7), %s1993_s8, 512, %s1995_s20, %s2001_s27, %s1787_s10, %s1787_s10, %s1788_s12  }
  0x72   : > { %p2220_p3 = scmp.ne.s32.totalorder %s2216_s30, 0 }
  0x73   : > { %s282_s9 = sand.u32 (!%p2220_p3), 1, %s1766_s22   ;;  %p2221_p8 = scmp.ne.s32.totalorder (!%p2220_p3), %s2215_s29, 0 }
  0x74   : > { %280 = sbr.rel (%p2220_p3) target bundleno = 1320 (0x528), region = 44  ;;  %s986_s17 = sshll.u32 (!%p2220_p3), %s282_s9, 5 }
  0x75   : > { %s283_s18 = scalar_lea.sflag (!%p2220_p3), [#allocation5], %s282_s9  ;;  %s2035_s13 = scalar_lea.vmem (!%p2220_p3), [#allocation4], %s986_s17 }
  0x7b   : > { %1745 = dma.done.wait (%p2221_p8), %s283_s18, 512  }
  0x7c   : > { %1747 = vsyncadd (%p2221_p8), %s283_s18, 4294966784  ;;  %p2222_p11 = scmp.ne.s32.totalorder %s2214_s28, 0 }
  0x7e   : > { %1749 = dma.done.wait (%p2222_p11), [#allocation8], 4096  }
  0x7f   : > { %1751 = vsyncadd (%p2222_p11), [#allocation8], 4294963200 }
  0x80   : > { %1753 = dma.done.wait (%p2222_p11), [#allocation11], 2048  }
  0x81   : > { %1755 = vsyncadd (%p2222_p11), [#allocation11], 4294965248  ;;  %p990_p7 = scmp.ne.s32.totalorder %s1774_s24, 0 }
  0x82   : > { %v1790_v0 = vmov (!%p990_p7), 0.0  }
  0x83   : > { %326 = sbr.rel (%p990_p7) target bundleno = 138 (0x8a), region = 64  ;;  %327 = vst [vmem:[#allocation3] sm:$0xff] (!%p990_p7), %v1790_v0 }
  0x8a PF: > { %v332_v1 = vld [vmem:[#allocation7] sm:$0xff]  ;;  %v333_v2 = vld [vmem:[#allocation7 + $0x8] sm:$0xff]  ;;  %v1791_v5 = vmov 0.0|0.0   ;;  %v334_v7 = vld [vmem:[#allocation7 + $0x10] sm:$0xff]  ;;  %vm1792_vm0 = vmmov 0   ;;  %v1793_v9 = vmov 0.0  }
  0x8b   : > { %v445_v3 = vld [vmem:[#allocation9] sm:$0xff]  ;;  %v1318_v4 = vpack.c.bf16 %v333_v2, %v332_v1  ;;  %1350 = vmatprep.subr.bf16.mxu1 %v1791_v5  ;;  %v446_v6 = vld [vmem:[#allocation9 + $0x8] sm:$0xff]  ;;  %v335_v8 = vld [vmem:[#allocation7 + $0x18] sm:$0xff]  ;;  %1175 = vmatprep.mubr.msk.f32.mxu1 %vm1792_vm0, %v1793_v9  ;;  %s2129_s30 = sshll.u32 %s1774_s24, 2  ;;  %p993_p13 = scmp.ne.s32.totalorder %s1774_s24, 1 }
  0x8c   : > { %v2053_v10 = vpack.c.bf16 %v446_v6, %v445_v3  ;;  %v1322_v11 = vpack.c.bf16 %v335_v8, %v334_v7  ;;  %v447_v12 = vld [vmem:[#allocation9 + $0x10] sm:$0xff]  ;;  %v448_v13 = vld [vmem:[#allocation9 + $0x18] sm:$0xff]  ;;  %v336_v14 = vld [vmem:[#allocation7 + $0x20] sm:$0xff]  ;;  %p534_p4 = scmp.lt.s32.totalorder %s2129_s30, 8  ;;  %s612_s12 = sadd.s32 1, %s2129_s30  ;;  %vm1795_vm5 = vmmov (!%p993_p13), 0  }
  0x8d   : > { %1319 = vmatprep.subr.bf16.mxu0 %v1318_v4  ;;  %v337_v15 = vld [vmem:[#allocation7 + $0x28] sm:$0xff]  ;;  %v2056_v16 = vpack.c.bf16 %v448_v13, %v447_v12  ;;  %v449_v18 = vld [vmem:[#allocation9 + $0x20] sm:$0xff]  ;;  %v338_v20 = vld [vmem:[#allocation7 + $0x30] sm:$0xff]  ;;  %p613_p5 = scmp.lt.s32.totalorder %s612_s12, 8  ;;  %s691_s8 = sadd.s32 2, %s2129_s30 }
  0x8e   : > { %1321 = vmatpush3.bf16.msra.mxu0 %v1318_v4  ;;  %1352 = vmatpush3.bf16.msra.mxu1 %v2053_v10  ;;  %v1326_v17 = vpack.c.bf16 %v337_v15, %v336_v14  ;;  %v450_v19 = vld [vmem:[#allocation9 + $0x28] sm:$0xff]  ;;  %v339_v21 = vld [vmem:[#allocation7 + $0x38] sm:$0xff]  ;;  %v451_v24 = vld [vmem:[#allocation9 + $0x30] sm:$0xff]  ;;  %s535_s10 = scalar_select %p534_p4, 1, 0 }
  0x8f   : > { %1323 = vmatprep.subr.bf16.mxu0 %v1322_v11  ;;  %1353 = vmatprep.subr.bf16.mxu1 %v1791_v5  ;;  %v2060_v22 = vpack.c.bf16 %v450_v19, %v449_v18  ;;  %v1330_v23 = vpack.c.bf16 %v339_v21, %v338_v20  ;;  %v452_v25 = vld [vmem:[#allocation9 + $0x38] sm:$0xff]  ;;  %v340_v26 = vld [vmem:[#allocation7 + $0x40] sm:$0xff]  ;;  %v341_v27 = vld [vmem:[#allocation7 + $0x48] sm:$0xff]  ;;  %s614_s20 = scalar_select %p613_p5, 1, 0 }
  0x90   : > { %v328_v28 = vld [vmem:[%s2035_s13] sm:$0xff]  ;;  %v2065_v29 = vpack.c.bf16 %v452_v25, %v451_v24  ;;  %v1334_v30 = vpack.c.bf16 %v341_v27, %v340_v26  ;;  %v454_v32 = vld [vmem:[#allocation9 + $0x48] sm:$0xff]  ;;  %v342_v33 = vld [vmem:[#allocation7 + $0x50] sm:$0xff]  ;;  %v536_v63 = vstv %s535_s10  ;;  %p692_p9 = scmp.lt.s32.totalorder %s691_s8, 8  ;;  %s770_s27 = sadd.s32 3, %s2129_s30 }
  0x91   : > { %1137 = vmatprep.mubr.f32.mxu0 %v328_v28  ;;  %v453_v31 = vld [vmem:[#allocation9 + $0x40] sm:$0xff]  ;;  %v343_v34 = vld [vmem:[#allocation7 + $0x58] sm:$0xff]  ;;  %v455_v37 = vld [vmem:[#allocation9 + $0x50] sm:$0xff]  ;;  %vm537_vm1 = vcmp.eq.s32.totalorder %v536_v63, 1  ;;  %p771_p12 = scmp.lt.s32.totalorder %s770_s27, 8  ;;  %v1794_v28 = vmov (!%p993_p13), 0.0|0.0  }
  0x92   : > { %1325 = vmatpush3.bf16.msra.mxu0 %v1322_v11  ;;  %1355 = vmatpush3.bf16.msra.mxu1 %v2056_v16  ;;  %v2069_v35 = vpack.c.bf16 %v454_v32, %v453_v31  ;;  %v1338_v36 = vpack.c.bf16 %v343_v34, %v342_v33  ;;  %v456_v38 = vld [vmem:[#allocation9 + $0x58] sm:$0xff]  ;;  %v344_v39 = vld [vmem:[#allocation7 + $0x60] sm:$0xff]  ;;  %v345_v40 = vld [vmem:[#allocation7 + $0x68] sm:$0xff]  ;;  %s693_s11 = scalar_select %p692_p9, 1, 0 }
  0x93   : > { %1327 = vmatprep.subr.bf16.mxu0 %v1326_v17  ;;  %1356 = vmatprep.subr.bf16.mxu1 %v1791_v5  ;;  %v2073_v41 = vpack.c.bf16 %v456_v38, %v455_v37  ;;  %v1342_v42 = vpack.c.bf16 %v345_v40, %v344_v39  ;;  %v457_v43 = vld [vmem:[#allocation9 + $0x60] sm:$0xff]  ;;  %v458_v44 = vld [vmem:[#allocation9 + $0x68] sm:$0xff]  ;;  %v346_v45 = vld [vmem:[#allocation7 + $0x70] sm:$0xff]  ;;  %s772_s14 = scalar_select %p771_p12, 1, 0 }
  0x94   : > { %v347_v46 = vld [vmem:[#allocation7 + $0x78] sm:$0xff]  ;;  %v2077_v47 = vpack.c.bf16 %v458_v44, %v457_v43  ;;  %v459_v49 = vld [vmem:[#allocation9 + $0x70] sm:$0xff]  ;;  %v329_v52 = vld [vmem:[%s2035_s13 + $0x8] sm:$0xff]  ;;  %v694_v15 = vstv %s693_s11  ;;  %v1796_v31 = vmov (!%p993_p13), 0.0  }
  0x95   : > { %v1346_v48 = vpack.c.bf16 %v347_v46, %v346_v45  ;;  %v460_v50 = vld [vmem:[#allocation9 + $0x78] sm:$0xff]  ;;  %v330_v54 = vld [vmem:[%s2035_s13 + $0x10] sm:$0xff]  ;;  %vm695_vm3 = vcmp.eq.s32.totalorder %v694_v15, 1  ;;  %v781_v25 = vld [vmem:[#allocation10] sm:$0xff] (!%p993_p13) }
  0x96   : > { %1329 = vmatpush3.bf16.msra.mxu0 %v1326_v17  ;;  %1358 = vmatpush3.bf16.msra.mxu1 %v2060_v22  ;;  %v2081_v51 = vpack.c.bf16 %v460_v50, %v459_v49  ;;  %v444_v53 = vld [vmem:[#allocation3] sm:$0xff]  ;;  %v782_v26 = vld [vmem:[#allocation10 + $0x8] sm:$0xff] (!%p993_p13)  ;;  %v783_v27 = vld [vmem:[#allocation10 + $0x10] sm:$0xff] (!%p993_p13) }
  0x97   : > { %1331 = vmatprep.subr.bf16.mxu0 %v1330_v23  ;;  %1359 = vmatprep.subr.bf16.mxu1 %v1791_v5  ;;  %v331_v55 = vld [vmem:[%s2035_s13 + $0x18] sm:$0xff]  ;;  %v785_v33 = vld [vmem:[#allocation10 + $0x20] sm:$0xff] (!%p993_p13)  ;;  %v786_v34 = vld [vmem:[#allocation10 + $0x28] sm:$0xff] (!%p993_p13) }
  0x98   : > { %v991_v56 = vld [vmem:[%s2205_s3] ss:$0 sm:$0xff]  ;;  %v789_v39 = vld [vmem:[#allocation10 + $0x40] sm:$0xff] (!%p993_p13)  ;;  %v790_v40 = vld [vmem:[#allocation10 + $0x48] sm:$0xff] (!%p993_p13) }
  0x99   : > { %v788_v37 = vld [vmem:[#allocation10 + $0x38] sm:$0xff] (!%p993_p13)  ;;  %v793_v45 = vld [vmem:[#allocation10 + $0x60] sm:$0xff] (!%p993_p13)  ;;  %v794_v46 = vld [vmem:[#allocation10 + $0x68] sm:$0xff] (!%p993_p13) }
  0x9a   : > { %1333 = vmatpush3.bf16.msra.mxu0 %v1330_v23  ;;  %1361 = vmatpush3.bf16.msra.mxu1 %v2065_v29  ;;  %v792_v43 = vld [vmem:[#allocation10 + $0x58] sm:$0xff] (!%p993_p13) }
  0x9b   : > { %1335 = vmatprep.subr.bf16.mxu0 %v1334_v30  ;;  %1362 = vmatprep.subr.bf16.mxu1 %v1791_v5  ;;  %v796_v49 = vld [vmem:[#allocation10 + $0x78] sm:$0xff] (!%p993_p13) }
  0x9e   : > { %1337 = vmatpush3.bf16.msra.mxu0 %v1334_v30  ;;  %1364 = vmatpush3.bf16.msra.mxu1 %v2069_v35  ;;  %v784_v30 = vld [vmem:[#allocation10 + $0x18] sm:$0xff] (!%p993_p13) }
  0x9f   : > { %1339 = vmatprep.subr.bf16.mxu0 %v1338_v36  ;;  %1365 = vmatprep.subr.bf16.mxu1 %v1791_v5  ;;  %v1450_v32 = vpack.c.bf16 (!%p993_p13), %v784_v30, %v783_v27 }
  0xa2   : > { %1341 = vmatpush3.bf16.msra.mxu0 %v1338_v36  ;;  %1367 = vmatpush3.bf16.msra.mxu1 %v2073_v41  ;;  %v787_v36 = vld [vmem:[#allocation10 + $0x30] sm:$0xff] (!%p993_p13) }
  0xa3   : > { %1343 = vmatprep.subr.bf16.mxu0 %v1342_v42  ;;  %1368 = vmatprep.subr.bf16.mxu1 %v1791_v5  ;;  %v1456_v38 = vpack.c.bf16 (!%p993_p13), %v788_v37, %v787_v36 }
  0xa6   : > { %1345 = vmatpush3.bf16.msra.mxu0 %v1342_v42  ;;  %1370 = vmatpush3.bf16.msra.mxu1 %v2077_v47  ;;  %v791_v42 = vld [vmem:[#allocation10 + $0x50] sm:$0xff] (!%p993_p13) }
  0xa7   : > { %1347 = vmatprep.subr.bf16.mxu0 %v1346_v48  ;;  %1371 = vmatprep.subr.bf16.mxu1 %v1791_v5  ;;  %v1462_v44 = vpack.c.bf16 (!%p993_p13), %v792_v43, %v791_v42 }
  0xaa   : > { %1349 = vmatpush3.bf16.msra.mxu0 %v1346_v48  ;;  %1373 = vmatpush3.bf16.msra.mxu1 %v2081_v51  ;;  %v795_v48 = vld [vmem:[#allocation10 + $0x70] sm:$0xff] (!%p993_p13) }
  0xab   : > { %1374 = vmatprep.subr.bf16.mxu0 %v1791_v5  ;;  %1398 = vmatprep.subr.bf16.mxu1 %v1791_v5  ;;  %v1468_v50 = vpack.c.bf16 (!%p993_p13), %v796_v49, %v795_v48 }
  0xad   : > { %1138 = vmatmul.mubr.f32.vlgmr.msra.gmra.mrb[0].mxu0 %v329_v52  ;;  %1176 = vmatmul.mubr.f32.vlgmr.msra.gmra.mrb[0].mxu1 %v444_v53 }
  0xae   : > { %1376 = vmatpush3.bf16.msra.mxu0 %v2053_v10  ;;  %1400 = vmatpush3.bf16.msra.mxu1 %v2053_v10 }
  0xaf   : > { %1377 = vmatprep.subr.bf16.mxu0 %v1791_v5  ;;  %1401 = vmatprep.subr.bf16.mxu1 %v1791_v5 }
  0xb0   : > { %1245 = vmatprep.mubr.msk.f32.mxu1 %vm1792_vm0, %v1793_v9  ;;  %1140 = vmatprep.mubr.f32.mxu0 %v330_v54 }
  0xb1   : > { %1141 = vmatmul.mubr.f32.gmra.mrb[2].mxu0 %v331_v55 }
  0xb2   : > { %1379 = vmatpush3.bf16.msra.mxu0 %v2056_v16  ;;  %1403 = vmatpush3.bf16.msra.mxu1 %v2056_v16 }
  0xb3   : > { %1380 = vmatprep.subr.bf16.mxu0 %v1791_v5  ;;  %1404 = vmatprep.subr.bf16.mxu1 %v1791_v5 }
  0xb4   : > { %1210 = vmatprep.mubr.msk.f32.mxu0 %vm1792_vm0, %v1793_v9 }
  0xb6   : > { %1382 = vmatpush3.bf16.msra.mxu0 %v2060_v22  ;;  %1406 = vmatpush3.bf16.msra.mxu1 %v2060_v22 }
  0xb7   : > { %1383 = vmatprep.subr.bf16.mxu0 %v1791_v5  ;;  %1407 = vmatprep.subr.bf16.mxu1 %v1791_v5 }
  0xba   : > { %1385 = vmatpush3.bf16.msra.mxu0 %v2065_v29  ;;  %1409 = vmatpush3.bf16.msra.mxu1 %v2065_v29 }
  0xbb   : > { %1386 = vmatprep.subr.bf16.mxu0 %v1791_v5  ;;  %1410 = vmatprep.subr.bf16.mxu1 %v1791_v5 }
  0xbe   : > { %1388 = vmatpush3.bf16.msra.mxu0 %v2069_v35  ;;  %1412 = vmatpush3.bf16.msra.mxu1 %v2069_v35 }
  0xbf   : > { %1389 = vmatprep.subr.bf16.mxu0 %v1791_v5  ;;  %1413 = vmatprep.subr.bf16.mxu1 %v1791_v5 }
  0xc2   : > { %1391 = vmatpush3.bf16.msra.mxu0 %v2073_v41  ;;  %1415 = vmatpush3.bf16.msra.mxu1 %v2073_v41 }
  0xc3   : > { %1392 = vmatprep.subr.bf16.mxu0 %v1791_v5  ;;  %1416 = vmatprep.subr.bf16.mxu1 %v1791_v5 }
  0xc6   : > { %1394 = vmatpush3.bf16.msra.mxu0 %v2077_v47  ;;  %1418 = vmatpush3.bf16.msra.mxu1 %v2077_v47 }
  0xc7   : > { %1395 = vmatprep.subr.bf16.mxu0 %v1791_v5  ;;  %1419 = vmatprep.subr.bf16.mxu1 %v1791_v5 }
  0xca   : > { %1397 = vmatpush3.bf16.msra.mxu0 %v2081_v51  ;;  %1421 = vmatpush3.bf16.msra.mxu1 %v2081_v51 }
  0xcb   : > { %1422 = vmatprep.subr.bf16.mxu0 %v1791_v5 }
 0x180   : > { %v1139_v57 = vpop.f32.mrb[0].mxu0  ;;  %v528_v58 = vpop.f32.mrb[0].mxu1 }
 0x181   : > { %v421_v59 = vpop.f32.mrb[1].mxu0  ;;  %v1177_v60 = vpop.f32.mrb[1].mxu1  ;;  %v427_v4 = vadd.f32 %v1139_v57, %v991_v56 }
 0x182   : > { %v422_v61 = vadd.f32 %v991_v56, %v421_v59 }
 0x184   : > { %v529_v62 = vadd.f32 %v528_v58, %v422_v61  ;;  %v1142_v2 = vpop.f32.mrb[2].mxu0 }
 0x185   : > { %v431_v3 = vpop.f32.mrb[3].mxu0  ;;  %v437_v18 = vadd.f32 %v1142_v2, %v991_v56 }
 0x186   : > { %1572 = vtanh.f32 %v529_v62 }
 0x190   : > { %v1573_v0 = vpop.eup %1572 }
 0x191   : > { %v538_v1 = vsel %vm537_vm1, %v1573_v0, %v444_v53 }
 0x192   : > { %1211 = vmatmul.mubr.f32.vlgmr.msra.gmra.mrb[4].mxu0 %v538_v1 }
 0x193   : > { %1424 = vmatpush3.bf16.msra.mxu0 %v2053_v10  ;;  %1280 = vmatprep.mubr.msk.f32.mxu0 %vm1792_vm0, %v1793_v9  ;;  %v615_v9 = vstv %s614_s20 }
 0x194   : > { %1425 = vmatprep.subr.bf16.mxu0 %v1791_v5  ;;  %vm616_vm2 = vcmp.eq.s32.totalorder %v615_v9, 1 }
 0x197   : > { %1427 = vmatpush3.bf16.msra.mxu0 %v2056_v16 }
 0x198   : > { %1428 = vmatprep.subr.bf16.mxu0 %v1791_v5 }
 0x19b   : > { %1430 = vmatpush3.bf16.msra.mxu0 %v2060_v22  ;;  %v773_v22 = vstv %s772_s14 }
 0x19c   : > { %1431 = vmatprep.subr.bf16.mxu0 %v1791_v5  ;;  %vm774_vm4 = vcmp.eq.s32.totalorder %v773_v22, 1 }
 0x19f   : > { %1433 = vmatpush3.bf16.msra.mxu0 %v2065_v29  ;;  %v1447_v29 = vpack.c.bf16 (!%p993_p13), %v782_v26, %v781_v25 }
 0x1a0   : > { %1434 = vmatprep.subr.bf16.mxu0 %v1791_v5 }
 0x1a3   : > { %1436 = vmatpush3.bf16.msra.mxu0 %v2069_v35  ;;  %v1453_v35 = vpack.c.bf16 (!%p993_p13), %v786_v34, %v785_v33 }
 0x1a4   : > { %1437 = vmatprep.subr.bf16.mxu0 %v1791_v5 }
 0x1a7   : > { %1439 = vmatpush3.bf16.msra.mxu0 %v2073_v41  ;;  %v1459_v41 = vpack.c.bf16 (!%p993_p13), %v790_v40, %v789_v39 }
 0x1a8   : > { %1440 = vmatprep.subr.bf16.mxu0 %v1791_v5 }
 0x1ab   : > { %1442 = vmatpush3.bf16.msra.mxu0 %v2077_v47  ;;  %v1465_v47 = vpack.c.bf16 (!%p993_p13), %v794_v46, %v793_v45 }
 0x1ac   : > { %1443 = vmatprep.subr.bf16.mxu0 %v1791_v5  ;;  %v432_v5 = vadd.f32 %v991_v56, %v431_v3 }
 0x1af   : > { %1445 = vmatpush3.bf16.msra.mxu0 %v2081_v51  ;;  %v994_v51 = vld [vmem:[%s2207_s5] ss:$0 sm:$0xff] (!%p993_p13) }
 0x1b0   : > { %1446 = vmatprep.subr.bf16.mxu0 (!%p993_p13), %v1794_v28 }
 0x265   : > { %v607_v6 = vpop.f32.mrb[4].mxu0 }
 0x266   : > { %v608_v7 = vadd.f32 %v607_v6, %v427_v4  ;;  %v1212_v8 = vpop.f32.mrb[5].mxu0 }
 0x268   : > { %1574 = vtanh.f32 %v608_v7 }
 0x272   : > { %v1575_v10 = vpop.eup %1574 }
 0x273   : > { %v617_v11 = vsel %vm616_vm2, %v1575_v10, %v538_v1 }
 0x274   : > { %1246 = vmatmul.mubr.f32.vlgmr.msra.gmra.mrb[2].mxu1 %v617_v11 }
 0x347   : > { %v686_v12 = vpop.f32.mrb[2].mxu1 }
 0x348   : > { %v687_v13 = vadd.f32 %v686_v12, %v432_v5  ;;  %v1247_v14 = vpop.f32.mrb[3].mxu1 }
 0x34a   : > { %1576 = vtanh.f32 %v687_v13 }
 0x354   : > { %v1577_v16 = vpop.eup %1576 }
 0x355   : > { %v696_v17 = vsel %vm695_vm3, %v1577_v16, %v617_v11 }
 0x356   : > { %1281 = vmatmul.mubr.f32.vlgmr.msra.gmra.mrb[6].mxu0 %v696_v17 }
 0x357   : > { %1315 = vmatprep.mubr.msk.f32.mxu0 (!%p993_p13), %vm1795_vm5, %v1796_v31  ;;  %1448 = vmatpush3.bf16.msra.mxu0 (!%p993_p13), %v1447_v29 }
 0x358   : > { %1449 = vmatprep.subr.bf16.mxu0 (!%p993_p13), %v1794_v28 }
 0x35b   : > { %1451 = vmatpush3.bf16.msra.mxu0 (!%p993_p13), %v1450_v32 }
 0x35c   : > { %1452 = vmatprep.subr.bf16.mxu0 (!%p993_p13), %v1794_v28 }
 0x35f   : > { %1454 = vmatpush3.bf16.msra.mxu0 (!%p993_p13), %v1453_v35 }
 0x360   : > { %1455 = vmatprep.subr.bf16.mxu0 (!%p993_p13), %v1794_v28 }
 0x363   : > { %1457 = vmatpush3.bf16.msra.mxu0 (!%p993_p13), %v1456_v38 }
 0x364   : > { %1458 = vmatprep.subr.bf16.mxu0 (!%p993_p13), %v1794_v28 }
 0x367   : > { %1460 = vmatpush3.bf16.msra.mxu0 (!%p993_p13), %v1459_v41 }
 0x368   : > { %1461 = vmatprep.subr.bf16.mxu0 (!%p993_p13), %v1794_v28 }
 0x36b   : > { %1463 = vmatpush3.bf16.msra.mxu0 (!%p993_p13), %v1462_v44 }
 0x36c   : > { %1464 = vmatprep.subr.bf16.mxu0 (!%p993_p13), %v1794_v28 }
 0x36f   : > { %1466 = vmatpush3.bf16.msra.mxu0 (!%p993_p13), %v1465_v47 }
 0x370   : > { %1467 = vmatprep.subr.bf16.mxu0 (!%p993_p13), %v1794_v28 }
 0x373   : > { %1469 = vmatpush3.bf16.msra.mxu0 (!%p993_p13), %v1468_v50 }
 0x429   : > { %v765_v19 = vpop.f32.mrb[6].mxu0 }
 0x42a   : > { %v766_v20 = vadd.f32 %v765_v19, %v437_v18  ;;  %v1282_v21 = vpop.f32.mrb[7].mxu0 }
 0x42c   : > { %1578 = vtanh.f32 %v766_v20 }
 0x432   : > { %780 = sbr.rel (%p993_p13) target bundleno = 1295 (0x50f), region = 68 }
 0x436   : > { %v1579_v23 = vpop.eup %1578 }
 0x437   : > { %v775_v24 = vsel %vm774_vm4, %v1579_v23, %v696_v17 }
 0x438   : > { %776 = vst [vmem:[#allocation3] sm:$0xff] %v775_v24  ;;  %1316 = vmatmul.mubr.f32.vlgmr.msra.gmra.mrb[0].mxu0 (!%p993_p13), %v775_v24 }
 0x50b   : > { %v870_v52 = vpop.f32.mrb[0].mxu0 }
 0x50c   : > { %v871_v53 = vadd.f32 %v994_v51, %v870_v52  ;;  %v1317_v54 = vpop.f32.mrb[1].mxu0 }
 0x50e   : > { %874 = vst [vmem:[#allocation12] sm:$0xff] %v871_v53 }
 0x50f PF: > { %s2223_s15 = sadd.s32 4294967295, %s1782_s26   ;;  %s1797_s9 = smov [#allocation12]  }
 0x510   : > { %p2158_p0 = scmp.eq.s32.totalorder %s2223_s15, 1  ;;  %s884_s17 = sshll.u32 %s1797_s9, 4  ;;  %s885_s17 = int_to_ptr.vmem [resolvable:$true] %s884_s17 }
 0x511   : > { %s1694_s18 = scalar_lea.vmem %s885_s17, 128  ;;  %p1701_p1 = scmp.lt.s32.totalorder %s885_s17, %s885_s17 }
 0x512   : > { %p1695_p2 = scmp.ne.s32.totalorder %s885_s17, %s1694_s18  ;;  %p1702_p3 = scmp.lt.s32.totalorder %s1694_s18, %s1694_s18 }
 0x514   : > { %p1696_p6 = pnand %p1695_p2, %p2158_p0  ;;  %p1703_p8 = por %p1702_p3, %p1701_p1 }
 0x516   : > { %p1697_p10 = pneg %p1696_p6 }
 0x518   : > { %p1704_p11 = pnand %p1703_p8, %p1697_p10 }
 0x51a   : > { %1707 = shalt.err (!%p1704_p11)
}
 0x51b   : > { %s1708_s29 = scalar_lea.hbm %s2208_s6, 128 }
 0x51c   : > { %p1709_p7 = scmp.ne.s32.totalorder %s2208_s6, %s1708_s29  ;;  %p1714_p9 = scmp.lt.u32.totalorder %s1708_s29, %s2208_s6 }
 0x51e   : > { %p1710_p4 = pnand %p1709_p7, %p2158_p0 }
 0x520   : > { %p1711_p5 = pneg %p1710_p4 }
 0x522   : > { %p1716_p12 = pnand %p1714_p9, %p1711_p5 }
 0x524   : > { %1719 = shalt.err (!%p1716_p12)
}
 0x525   : > { %1485 = dma.vmem_to_hbm [thread:$0]  (%p2158_p0), %s885_s17, 128, %s2208_s6, [#allocation6]  }
 0x526   : > { %1757 = dma.done.wait (%p2158_p0), [#allocation6], 128  }
 0x527   : > { %1759 = vsyncadd (%p2158_p0), [#allocation6], 4294967168 }
 0x528 PF: > { %s22_s26 = sadd.s32 1, %s1782_s26   ;;  %s2225_s27 = smov %s1988_s21 }
 0x529   : > { %p19_p13 = scmp.ge.s32.totalorder %s22_s26, 4   ;;  %s2226_s21 = smov %s1766_s22 }
 0x52a   : > { %s2227_s22 = smov %s1770_s23  ;;  %s2228_s23 = smov %s2225_s27 }
 0x52b   : > { %s2229_s24 = smov %s1778_s25  ;;  %s2230_s25 = smov %s2232_s19 }
 0x52c   :  { %21 = sbr.rel (!%p19_p13) target bundleno = 7 (0x7), region = 105 }
 0x533   :  { %897 = vsyncpa [#allocation5], 1 }
 0x534   :  { %899 = vsyncpa [#allocation5 + $0x1], 1 }
 0x535   :  { %900 = vsyncpa [#allocation8], 1 }
 0x536   :  { %901 = vsyncpa [#allocation11], 1 }
 0x537   :  { %902 = vsyncpa [#allocation6], 1 }
 0x538   :  { %904 = vsyncpa [#allocation6 + $0x1], 1 }

</bundles_post_ra>
